<compile_context>
chip_gen: v7x
topology: tpu7x:2x2x1
jax: 0.10.0
libtpu: 0.0.40
codegen_flags: <defaults>
</compile_context>

<pallas_src>
import functools

import jax
import jax.numpy as jnp
from jax.experimental import pallas as pl
from jax.experimental.pallas import tpu as pltpu

IN_FEATURES = 100
HIDDEN = 200
OUT_FEATURES = 10

HID_PAD = 256  # lane-aligned hidden width (zero-padded cols of w1 / rows of w2)


def _round_up(x, m):
    return (x + m - 1) // m * m


def tiny_model_kernel(x_ref, w1_ref, b1_ref, w2_ref, b2_ref, o_ref):
    # x tile: (tile_b, 100) f32 straight from HBM; cast to bf16 for the MXU.
    x = x_ref[...].astype(jnp.bfloat16)                                   # (tb, 100)
    h = jnp.dot(x, w1_ref[...],
                preferred_element_type=jnp.float32) + b1_ref[...]         # (tb, 256) f32
    h = jnp.maximum(h, 0.0)                                               # ReLU (VPU)
    logits = jnp.dot(h.astype(jnp.bfloat16), w2_ref[...],
                     preferred_element_type=jnp.float32) + b2_ref[...]    # (tb, 10) f32
    # Numerically stable softmax over the 10 real classes (no padded lanes).
    m = jnp.max(logits, axis=-1, keepdims=True)
    e = jnp.exp(logits - m)
    denom = jnp.sum(e, axis=-1, keepdims=True)
    o_ref[...] = (e * pl.reciprocal(denom, approx=False)).astype(o_ref.dtype)


@functools.partial(jax.jit, static_argnames=("tile_b",))
def tiny_model_forward(x, w1, b1, w2, b2, tile_b=2048):
    """x: (B, 100) f32. Params from init_params.

    Returns (B, 10) f32 softmax probabilities (dim=1, matching nn.Softmax on 2-D).
    """
    B = x.shape[0]
    # Ensure the grid has >= 2 steps whenever the batch can be split, so
    # dimension_semantics=("parallel",) actually uses both TCs on v7x; never
    # drop below the 8-sublane minimum tile.
    tile_b = max(8, min(tile_b, _round_up(pl.cdiv(B, 2), 8)))
    # Pad batch only to a multiple of 8 (sublane), never to a multiple of
    # tile_b; Pallas handles the partial tail block itself.
    b_pad = _round_up(B, 8)
    if b_pad != B:
        x = jnp.pad(x, ((0, b_pad - B), (0, 0)))
    grid = pl.cdiv(b_pad, tile_b)

    flops = 2 * b_pad * (IN_FEATURES * HID_PAD + HID_PAD * OUT_FEATURES)
    bytes_accessed = (b_pad * IN_FEATURES * 4 + w1.size * 2 + w2.size * 2
                      + b1.size * 4 + b2.size * 4 + b_pad * OUT_FEATURES * 4)

    out = pl.pallas_call(
        tiny_model_kernel,
        out_shape=jax.ShapeDtypeStruct((b_pad, OUT_FEATURES), jnp.float32),
        grid=(grid,),
        in_specs=[
            pl.BlockSpec((tile_b, IN_FEATURES), lambda i: (i, 0)),    # x: tiled over batch
            pl.BlockSpec((IN_FEATURES, HID_PAD), lambda i: (0, 0)),   # weights: resident
            pl.BlockSpec((1, HID_PAD), lambda i: (0, 0)),
            pl.BlockSpec((HID_PAD, OUT_FEATURES), lambda i: (0, 0)),
            pl.BlockSpec((1, OUT_FEATURES), lambda i: (0, 0)),
        ],
        out_specs=pl.BlockSpec((tile_b, OUT_FEATURES), lambda i: (i, 0)),
        compiler_params=pltpu.CompilerParams(
            dimension_semantics=("parallel",),   # shards batch over the 2 TCs on v7x
            vmem_limit_bytes=32 * 1024 * 1024,   # ample headroom at tile_b<=4096, even on v7x
        ),
        cost_estimate=pl.CostEstimate(
            flops=flops,
            transcendentals=b_pad * OUT_FEATURES,
            bytes_accessed=bytes_accessed,
        ),
    )(x, w1, b1, w2, b2)
    return out[:B]


def init_params(key):
    """torch.nn.Linear-style U(-1/sqrt(fan_in), 1/sqrt(fan_in)) init, stored
    pre-transposed (in, out); hidden dim zero-padded to 256; weights bf16."""
    k1, k2, k3, k4 = jax.random.split(key, 4)
    bound1 = 1.0 / jnp.sqrt(IN_FEATURES)
    bound2 = 1.0 / jnp.sqrt(HIDDEN)
    w1 = jax.random.uniform(k1, (IN_FEATURES, HIDDEN), jnp.float32, -bound1, bound1)
    b1 = jax.random.uniform(k2, (1, HIDDEN), jnp.float32, -bound1, bound1)
    w2 = jax.random.uniform(k3, (HIDDEN, OUT_FEATURES), jnp.float32, -bound2, bound2)
    b2 = jax.random.uniform(k4, (1, OUT_FEATURES), jnp.float32, -bound2, bound2)

    # Hidden-dim padding is zero everywhere: padded hidden columns stay zero
    # through ReLU, and the corresponding zero rows of w2 contribute nothing.
    w1p = jnp.zeros((IN_FEATURES, HID_PAD), jnp.bfloat16)
    w1p = w1p.at[:, :HIDDEN].set(w1.astype(jnp.bfloat16))
    b1p = jnp.zeros((1, HID_PAD), jnp.float32).at[:, :HIDDEN].set(b1)
    w2p = jnp.zeros((HID_PAD, OUT_FEATURES), jnp.bfloat16)
    w2p = w2p.at[:HIDDEN, :].set(w2.astype(jnp.bfloat16))
    return w1p, b1p, w2p, b2


def _reference(x, w1p, b1p, w2p, b2):
    """Pure-JAX reference mimicking the kernel's bf16-MXU / f32-accum path."""
    # TODO(synk): bf16 MXU inputs deviate ~1e-3 rel. from a pure-fp32 torch model.
    xb = x.astype(jnp.bfloat16).astype(jnp.float32)
    h = jnp.maximum(xb @ w1p.astype(jnp.float32) + b1p, 0.0)              # (B, 256)
    logits = h.astype(jnp.bfloat16).astype(jnp.float32) @ w2p.astype(jnp.float32) + b2
    return jax.nn.softmax(logits, axis=-1)                                # (B, 10)


if __name__ == "__main__":
    key = jax.random.PRNGKey(0)
    k_params, k_x1, k_x2 = jax.random.split(key, 3)
    params = init_params(k_params)

    ok = True
    # Small batch (single grid step, row-padded to 8) and a larger batch that
    # exercises the 2-step grid (both TCs on v7x) plus the row-padding path.
    for k_x, batch in ((k_x1, 2), (k_x2, 300)):
        x = jax.random.uniform(k_x, (batch, IN_FEATURES), jnp.float32)  # like torch.rand
        out = jax.block_until_ready(tiny_model_forward(x, *params))

        ref = _reference(x, *params)
        ok &= out.shape == (batch, OUT_FEATURES)
        ok &= bool(jnp.allclose(out, ref, atol=1e-4, rtol=1e-4))
        ok &= bool(jnp.allclose(jnp.sum(out, axis=-1), 1.0, atol=1e-5))
        ok &= bool(jnp.all(jnp.isfinite(out)))

    assert ok
    print("KERNEL_OK")
</pallas_src>

<mosaic_0001>
module attributes {stable_mosaic.version = 11 : i64} {
  func.func @tiny_model_kernel(%arg0: i32, %arg1: memref<8x100xf32, #tpu.memory_space<vmem>>, %arg2: memref<100x256xbf16, #tpu.memory_space<vmem>>, %arg3: memref<1x256xf32, #tpu.memory_space<vmem>>, %arg4: memref<256x10xbf16, #tpu.memory_space<vmem>>, %arg5: memref<1x10xf32, #tpu.memory_space<vmem>>, %arg6: memref<8x10xf32, #tpu.memory_space<vmem>>) attributes {dimension_semantics = [#tpu.dimension_semantics<parallel>], iteration_bounds = array<i64: 1>, scalar_prefetch = 0 : i64, scratch_operands = 0 : i64, tpu.core_type = #tpu.core_type<tc>, window_params = [{transform_indices = @transform_0, window_bounds = array<i64: 8, 100>}, {pipeline_mode = #tpu.pipeline_mode<synchronous>, transform_indices = @transform_1, window_bounds = array<i64: 100, 256>}, {pipeline_mode = #tpu.pipeline_mode<synchronous>, transform_indices = @transform_2, window_bounds = array<i64: 1, 256>}, {pipeline_mode = #tpu.pipeline_mode<synchronous>, transform_indices = @transform_3, window_bounds = array<i64: 256, 10>}, {pipeline_mode = #tpu.pipeline_mode<synchronous>, transform_indices = @transform_4, window_bounds = array<i64: 1, 10>}, {transform_indices = @transform_5, window_bounds = array<i64: 8, 10>}]} {
    %c0 = arith.constant 0 : index
    %c0_0 = arith.constant 0 : index
    %0 = vector.load %arg1[%c0, %c0_0] : memref<8x100xf32, #tpu.memory_space<vmem>>, vector<8x100xf32>
    %1 = arith.truncf %0 : vector<8x100xf32> to vector<8x100xbf16>
    %c0_1 = arith.constant 0 : index
    %c0_2 = arith.constant 0 : index
    %2 = vector.load %arg2[%c0_1, %c0_2] : memref<100x256xbf16, #tpu.memory_space<vmem>>, vector<100x256xbf16>
    %cst = arith.constant dense<0.000000e+00> : vector<8x256xf32>
    %3 = tpu.matmul %1, %2, %cst {dimension_numbers = #tpu.dot_dimension_numbers<[1], [0], [0], [1], [0, 0, 1, 1], [], []>} : vector<8x100xbf16>, vector<100x256xbf16>, vector<8x256xf32> -> vector<8x256xf32>
    %c0_3 = arith.constant 0 : index
    %c0_4 = arith.constant 0 : index
    %4 = vector.load %arg3[%c0_3, %c0_4] : memref<1x256xf32, #tpu.memory_space<vmem>>, vector<1x256xf32>
    %5 = vector.broadcast %4 : vector<1x256xf32> to vector<8x256xf32>
    %6 = arith.addf %3, %5 : vector<8x256xf32>
    %cst_5 = arith.constant 0.000000e+00 : f32
    %7 = vector.broadcast %cst_5 : f32 to vector<8x256xf32>
    %8 = arith.maximumf %6, %7 : vector<8x256xf32>
    %9 = arith.truncf %8 : vector<8x256xf32> to vector<8x256xbf16>
    %c0_6 = arith.constant 0 : index
    %c0_7 = arith.constant 0 : index
    %10 = vector.load %arg4[%c0_6, %c0_7] : memref<256x10xbf16, #tpu.memory_space<vmem>>, vector<256x10xbf16>
    %cst_8 = arith.constant dense<0.000000e+00> : vector<8x10xf32>
    %11 = tpu.matmul %9, %10, %cst_8 {dimension_numbers = #tpu.dot_dimension_numbers<[1], [0], [0], [1], [0, 0, 1, 1], [], []>} : vector<8x256xbf16>, vector<256x10xbf16>, vector<8x10xf32> -> vector<8x10xf32>
    %c0_9 = arith.constant 0 : index
    %c0_10 = arith.constant 0 : index
    %12 = vector.load %arg5[%c0_9, %c0_10] : memref<1x10xf32, #tpu.memory_space<vmem>>, vector<1x10xf32>
    %13 = vector.broadcast %12 : vector<1x10xf32> to vector<8x10xf32>
    %14 = arith.addf %11, %13 : vector<8x10xf32>
    %cst_11 = arith.constant dense<0xFF800000> : vector<8xf32>
    %15 = vector.multi_reduction <maximumf>, %14, %cst_11 [1] : vector<8x10xf32> to vector<8xf32>
    %16 = vector.shape_cast %15 : vector<8xf32> to vector<8x1xf32>
    %17 = vector.broadcast %16 : vector<8x1xf32> to vector<8x10xf32>
    %18 = arith.subf %14, %17 : vector<8x10xf32>
    %19 = math.exp %18 : vector<8x10xf32>
    %cst_12 = arith.constant dense<0.000000e+00> : vector<8xf32>
    %20 = vector.multi_reduction <add>, %19, %cst_12 [1] : vector<8x10xf32> to vector<8xf32>
    %21 = vector.shape_cast %20 : vector<8xf32> to vector<8x1xf32>
    %22 = tpu.reciprocal %21 : vector<8x1xf32> -> vector<8x1xf32>
    %23 = vector.broadcast %22 : vector<8x1xf32> to vector<8x10xf32>
    %24 = arith.mulf %19, %23 : vector<8x10xf32>
    %c0_13 = arith.constant 0 : index
    %c0_14 = arith.constant 0 : index
    %25 = vector.load %arg6[%c0_13, %c0_14] : memref<8x10xf32, #tpu.memory_space<vmem>>, vector<8x10xf32>
    tpu.vector_store %arg6[%c0_13, %c0_14], %24 {strides = array<i32>} : memref<8x10xf32, #tpu.memory_space<vmem>>, vector<8x10xf32>,
    return
  }
  func.func @transform_0(%arg0: i32) -> (i32, i32) {
    %c0_i32 = arith.constant 0 : i32
    %c0_i32_0 = arith.constant 0 : i32
    return %arg0, %c0_i32 : i32, i32
  }
  func.func @transform_1(%arg0: i32) -> (i32, i32) {
    %c0_i32 = arith.constant 0 : i32
    %c0_i32_0 = arith.constant 0 : i32
    %c0_i32_1 = arith.constant 0 : i32
    return %c0_i32, %c0_i32_0 : i32, i32
  }
  func.func @transform_2(%arg0: i32) -> (i32, i32) {
    %c0_i32 = arith.constant 0 : i32
    %c0_i32_0 = arith.constant 0 : i32
    %c0_i32_1 = arith.constant 0 : i32
    return %c0_i32, %c0_i32_0 : i32, i32
  }
  func.func @transform_3(%arg0: i32) -> (i32, i32) {
    %c0_i32 = arith.constant 0 : i32
    %c0_i32_0 = arith.constant 0 : i32
    %c0_i32_1 = arith.constant 0 : i32
    return %c0_i32, %c0_i32_0 : i32, i32
  }
  func.func @transform_4(%arg0: i32) -> (i32, i32) {
    %c0_i32 = arith.constant 0 : i32
    %c0_i32_0 = arith.constant 0 : i32
    %c0_i32_1 = arith.constant 0 : i32
    return %c0_i32, %c0_i32_0 : i32, i32
  }
  func.func @transform_5(%arg0: i32) -> (i32, i32) {
    %c0_i32 = arith.constant 0 : i32
    %c0_i32_0 = arith.constant 0 : i32
    return %arg0, %c0_i32 : i32, i32
  }
}

</mosaic_0001>

<bundles_post_ra>
// kernel: tiny_model_forward.1
= control target key start
LH: loop header
LB: loop body
LE: loop exit
PB: predicated region body
PF: predicated region fallthrough
CT: control target
= control target key end

     0   :  { %v457_v1 = vmov 0   ;;  %vm117_vm0 = vcmask 1041408   ;;  %vm113_vm1 = vcmask 818176   ;;  %v38_v35 = vlaneseq  ;;  %s590_s1 = inlined_call_operand.vmem [shape: bf16[100,256], index: 1, kind: input, shape index: {}]   ;;  %s591_s3 = inlined_call_operand.vmem [shape: bf16[256,10], index: 3, kind: input, shape index: {}]   ;;  %s592_s0 = inlined_call_operand.vmem [shape: f32[8,100], index: 0, kind: input, shape index: {}]   ;;  %s593_s2 = inlined_call_operand.vmem [shape: f32[1,256], index: 2, kind: input, shape index: {}]   ;;  %s594_s4 = inlined_call_operand.vmem [shape: f32[1,10], index: 4, kind: input, shape index: {}]   ;;  %s595_s5 = inlined_call_operand.vmem [shape: f32[8,10], index: 5, kind: output, shape index: {}]  }
   0x1   :  { %v417_v0 = vld [vmem:[%s590_s1 + $0x4] ss:$8 sps:$4 sm:$0xff]   ;;  %156 = vmatprep.mubr.bf16.mxu0 %v457_v1  ;;  %v419_v2 = vld [vmem:[%s590_s1] ss:$8 sps:$4 sm:$0xff]   ;;  %v420_v3 = vld [vmem:[%s590_s1 + $0x14] ss:$8 sps:$4 sm:$0xff]  }
   0x2   :  { %124 = vmatprep.subr.bf16.mxu0 %v417_v0  ;;  %v422_v4 = vld [vmem:[%s590_s1 + $0x10] ss:$8 sps:$4 sm:$0xff]   ;;  %v423_v5 = vld [vmem:[%s590_s1 + $0x24] ss:$8 sps:$4 sm:$0xff]   ;;  %v425_v6 = vld [vmem:[%s590_s1 + $0x20] ss:$8 sps:$4 sm:$0xff]  }
   0x3   :  { %125 = vmatpush1.bf16.msra.mxu0 %v419_v2  ;;  %v426_v7 = vld [vmem:[%s590_s1 + $0x34] ss:$8 sps:$4 sm:$0xff]   ;;  %v428_v8 = vld [vmem:[%s590_s1 + $0x30] ss:$8 sps:$4 sm:$0xff]   ;;  %v437_v9 = vld [vmem:[%s591_s3 + $0x40] sm:$0xff]   ;;  %v39_v36 = vshrl.u32 %v38_v35, 7 }
   0x4   :  { %126 = vmatprep.subr.bf16.mxu0 %v420_v3  ;;  %v429_v10 = vld [vmem:[%s590_s1 + $0x44] ss:$8 sps:$4 sm:$0xff]   ;;  %394 = vmatprep.subr.bf16.mxu1 %v437_v9  ;;  %v431_v14 = vld [vmem:[%s590_s1 + $0x40] ss:$8 sps:$4 sm:$0xff]   ;;  %v441_v15 = vld [vmem:[%s591_s3 + $0x50] sm:$0xff]   ;;  %vm344_vm2 = vcmask 80896  }
   0x5   :  { %v438_v11 = vld [vmem:[%s591_s3] sm:$0xff]   ;;  %v439_v12 = vld [vmem:[%s591_s3 + $0x48] sm:$0xff]   ;;  %v432_v16 = vld [vmem:[%s590_s1 + $0x54] ss:$8 sps:$4 sm:$0xff]   ;;  %v40_v37 = vsub.s32 0, %v39_v36  ;;  %v44_v39 = vsub.s32 1, %v39_v36 }
   0x6   :  { %395 = vmatpush3.bf16.msra.mxu1 %v438_v11  ;;  %v440_v13 = vld [vmem:[%s591_s3 + $0x8] sm:$0xff]   ;;  %v35_v17 = vld [vmem:[%s590_s1 + $0x60] sm:$0x33]  ;;  %v442_v18 = vld [vmem:[%s591_s3 + $0x10] sm:$0xff]  }
   0x7   :  { %127 = vmatpush1.bf16.msra.mxu0 %v422_v4  ;;  %396 = vmatprep.subr.bf16.mxu1 %v439_v12  ;;  %v443_v19 = vld [vmem:[%s591_s3 + $0x58] sm:$0xff]   ;;  %v374_v21 = vcombine.high %v35_v17, %v35_v17  ;;  %v373_v22 = vcombine.low %v35_v17, %v35_v17  ;;  %v445_v24 = vld [vmem:[%s591_s3 + $0x60] sm:$0xff]   ;;  %v447_v28 = vld [vmem:[%s591_s3 + $0x68] sm:$0xff]  }
   0x8   :  { %128 = vmatprep.subr.bf16.mxu0 %v423_v5  ;;  %v434_v20 = vld [vmem:[%s590_s1 + $0x50] ss:$8 sps:$4 sm:$0xff]   ;;  %v21_v25 = vld [vmem:[%s592_s0] sm:$0xff]  ;;  %v448_v30 = vld [vmem:[%s591_s3 + $0x28] sm:$0xff]  }
   0x9   :  { %v444_v23 = vld [vmem:[%s591_s3 + $0x18] sm:$0xff]   ;;  %v119_v26 = vsel %vm117_vm0, %v373_v22, 0  ;;  %v446_v27 = vld [vmem:[%s591_s3 + $0x20] sm:$0xff]   ;;  %v22_v29 = vpack.c.bf16 %v21_v25, %v21_v25  ;;  %v449_v31 = vld [vmem:[%s591_s3 + $0x70] sm:$0xff]  }
   0xa   :  { %397 = vmatpush3.bf16.msra.mxu1 %v440_v13  ;;  %v450_v32 = vld [vmem:[%s591_s3 + $0x30] sm:$0xff]   ;;  %v451_v33 = vld [vmem:[%s591_s3 + $0x78] sm:$0xff]   ;;  %v36_v38 = vld [vmem:[%s593_s2] sm:$0x3] }
   0xb   :  { %129 = vmatpush1.bf16.msra.mxu0 %v425_v6  ;;  %398 = vmatprep.subr.bf16.mxu1 %v441_v15  ;;  %v452_v34 = vld [vmem:[%s591_s3 + $0x38] sm:$0xff]   ;;  %v41_v40 = vrot.slane %v36_v38, %v40_v37  ;;  %v45_v41 = vrot.slane %v36_v38, %v44_v39  ;;  %v377_v54 = vld [vmem:[%s594_s4] ss:$0 sm:$0xff] }
   0xc   :  { %130 = vmatprep.subr.bf16.mxu0 %v426_v7 }
   0xe   :  { %399 = vmatpush3.bf16.msra.mxu1 %v442_v18 }
   0xf   :  { %131 = vmatpush1.bf16.msra.mxu0 %v428_v8  ;;  %400 = vmatprep.subr.bf16.mxu1 %v443_v19 }
  0x10   :  { %132 = vmatprep.subr.bf16.mxu0 %v429_v10 }
  0x12   :  { %401 = vmatpush3.bf16.msra.mxu1 %v444_v23 }
  0x13   :  { %133 = vmatpush1.bf16.msra.mxu0 %v431_v14  ;;  %402 = vmatprep.subr.bf16.mxu1 %v445_v24 }
  0x14   :  { %134 = vmatprep.subr.bf16.mxu0 %v432_v16 }
  0x16   :  { %403 = vmatpush3.bf16.msra.mxu1 %v446_v27 }
  0x17   :  { %135 = vmatpush1.bf16.msra.mxu0 %v434_v20  ;;  %404 = vmatprep.subr.bf16.mxu1 %v447_v28 }
  0x18   :  { %375 = vmatprep.subr.msk.bf16.mxu0 %vm117_vm0, %v374_v21 }
  0x1a   :  { %405 = vmatpush3.bf16.msra.mxu1 %v448_v30 }
  0x1b   :  { %137 = vmatpush1.bf16.msra.mxu0 %v119_v26  ;;  %406 = vmatprep.subr.bf16.mxu1 %v449_v31 }
  0x1e   :  { %376 = vmatmul.mubr.msk.bf16.vlgmr.msra.gmra.mrb[0].mxu0 %vm113_vm1, %v22_v29  ;;  %407 = vmatpush3.bf16.msra.mxu1 %v450_v32 }
  0x1f   :  { %408 = vmatprep.subr.bf16.mxu1 %v451_v33 }
  0x22   :  { %409 = vmatpush3.bf16.msra.mxu1 %v452_v34 }
  0xf1   :  { %v158_v42 = vpop.f32.mrb[0].mxu0 }
  0xf2   :  { %v159_v43 = vadd.f32 %v158_v42, %v41_v40  ;;  %v160_v44 = vpop.f32.mrb[1].mxu0 }
  0xf3   :  { %v161_v45 = vadd.f32 %v160_v44, %v45_v41  ;;  %v162_v46 = vpop.f32.mrb[2].mxu0 }
  0xf4   :  { %v165_v47 = vmax.f32 %v159_v43, 0.0  ;;  %v163_v48 = vpop.f32.mrb[3].mxu0 }
  0xf5   :  { %v166_v49 = vmax.f32 %v161_v45, 0.0 }
  0xf6   :  { %v167_v51 = vpack.c.bf16 %v165_v47, %v165_v47 }
  0xf7   :  { %v168_v50 = vpack.c.bf16 %v166_v49, %v166_v49 }
  0xf9   :  { %336 = vmatprep.mubr.bf16.mxu1 %v168_v50 }
  0xfa   :  { %337 = vmatmul.mubr.bf16.vlgmr.msra.gmra.mrb[0].mxu1 %v167_v51 }
 0x1cd   :  { %v410_v52 = vpop.f32.mrb[0].mxu1 }
 0x1ce   :  { %v411_v53 = vpop.f32.mrb[1].mxu1 }
 0x1cf   :  { %v412_v55 = vadd.f32 %v411_v53, %v410_v52  ;;  %v413_v56 = vpop.f32.mrb[2].mxu1 }
 0x1d0   :  { %v414_v57 = vpop.f32.mrb[3].mxu1 }
 0x1d1   :  { %v339_v58 = vadd.f32 %v412_v55, %v377_v54 }
 0x1d3   :  { %v345_v59 = vsel %vm344_vm2, %v339_v58, -inf }
 0x1d4   :  { %346 = vmax.xlane.f32.xlu0 %v345_v59 }
 0x261   :  { %v347_v60 = vpop.xlane.xlu0 %346 }
 0x262   :  { %v348_v61 = vsub.f32 %v339_v58, %v347_v60 }
 0x264   :  { %v349_v62 = vmul.f32 1.442695, %v348_v61 }
 0x266   :  { %453 = vpow2.f32 %v349_v62 }
 0x270   :  { %v454_v63 = vpop.eup %453 }
 0x271   :  { %v351_v0 = vsel %vm344_vm2, %v454_v63, 0.0 }
 0x272   :  { %352 = vadd.xlane.f32.xlu0 %v351_v0 }
 0x2ff   :  { %v353_v1 = vpop.xlane.xlu0 %352 }
 0x300   :  { %455 = vrcp.f32 %v353_v1 }
 0x30a   :  { %v456_v2 = vpop.eup %455 }
 0x30b   :  { %v355_v3 = vmul.f32 %v456_v2, %v454_v63 }
 0x30d   :  { %356 = vst.msk [vmem:[%s595_s5] sm:$0xff] %vm344_vm2, %v355_v3 }

</bundles_post_ra>
